<compile_context>
chip_gen: v7x
topology: tpu7x:2x2x1
jax: 0.10.0
libtpu: 0.0.40
codegen_flags: <defaults>
</compile_context>

<pallas_src>
import functools
import math

import jax
import jax.numpy as jnp
from jax.experimental import pallas as pl
from jax.experimental.pallas import tpu as pltpu


def _gelu(x, approx):
    if approx:
        # tanh approximation: the transcendental runs in the otherwise-idle
        # EUP slot instead of a long erf polynomial on the VALU.
        return jax.nn.gelu(x, approximate=True)
    # PyTorch F.gelu default (approximate='none'): 0.5*x*(1+erf(x/sqrt(2)))
    return 0.5 * x * (1.0 + jax.lax.erf(x * (1.0 / math.sqrt(2.0))))


def _edge_network_kernel(num_layers, eps, approx_gelu, mxu_dtype, *refs):
    """One grid step = one neighbor channel k, owning its full (B, *) slab.

    refs = (x_ref,
            w_1, b_1, ..., w_L, b_L,      # resident hidden-layer weights
            w_out, b_out,                 # resident output-layer weights
            gammas, betas,                # SMEM (L, K) BatchNorm affine
            out_ref)
    """
    x_ref = refs[0]
    w_out_ref = refs[1 + 2 * num_layers]
    b_out_ref = refs[2 + 2 * num_layers]
    gammas_ref = refs[3 + 2 * num_layers]   # SMEM (L, K) f32
    betas_ref = refs[4 + 2 * num_layers]    # SMEM (L, K) f32
    out_ref = refs[-1]

    k = pl.program_id(0)
    x = x_ref[0]                            # (B, edge_dim), mxu_dtype
    B = x.shape[0]

    for layer in range(num_layers):
        w = refs[1 + 2 * layer][...]        # (in, H), mxu_dtype, resident
        b = refs[2 + 2 * layer][...]        # (1, H), f32
        H = w.shape[1]

        # Linear on the MXU with f32 accumulation, GELU in f32.
        y = _gelu(jnp.dot(x, w, preferred_element_type=jnp.float32) + b,
                  approx_gelu)                                  # (B, H) f32

        # BatchNorm1d(num_neighbors), training-mode batch stats.  This grid
        # step owns the whole (B, H) slab of channel k, so the statistics are
        # a plain local two-pass mean/var (biased), avoiding both the one-pass
        # E[y^2]-E[y]^2 cancellation and any cross-tile relayout work.
        inv_n = 1.0 / (B * H)
        mean = jnp.sum(jnp.sum(y, axis=1, keepdims=True),
                       axis=0, keepdims=True) * inv_n           # (1, 1)
        yc = y - mean
        var = jnp.sum(jnp.sum(yc * yc, axis=1, keepdims=True),
                      axis=0, keepdims=True) * inv_n            # (1, 1)
        scale = gammas_ref[layer, k] * jax.lax.rsqrt(var + eps)  # (1, 1)
        # Fused normalize + affine + GELU, with a single cast to the MXU
        # operand dtype for the next matmul.
        x = _gelu(yc * scale + betas_ref[layer, k],
                  approx_gelu).astype(mxu_dtype)

    # Final Linear, no activation; stored at its true width (no lane padding).
    out = jnp.dot(x, w_out_ref[...], preferred_element_type=jnp.float32)
    out_ref[0] = (out + b_out_ref[...]).astype(out_ref.dtype)


def edge_network_forward(x, params, *, num_layers, output_dim, eps=1e-5,
                         mxu_dtype=jnp.bfloat16, approx_gelu=False):
    """x: (B, K, edge_dim) f32 -> (B, K, output_dim) f32.

    mxu_dtype=bf16 (default) halves weight/activation VMEM + DMA traffic and
    doubles MXU issue rate on every generation; BN stats, GELU math and
    accumulation stay f32.  This is a documented model-level numerics choice:
    pass mxu_dtype=jnp.float32 (and approx_gelu=False) for PyTorch-equivalent
    numerics.
    """
    B, K, E = x.shape

    # Wrapper-side layout plumbing: one grid step per neighbor channel, so
    # present x as (K, B, E).  These transposes are tiny XLA ops.
    x_t = jnp.transpose(x, (1, 0, 2)).astype(mxu_dtype)

    resident = lambda k: (0, 0)          # weights stay resident across the grid
    flat = []
    in_specs = [pl.BlockSpec((1, B, E), lambda k: (k, 0, 0))]
    hidden_dims, gammas, betas = [], [], []
    for (w, b, g, bt) in params["hidden"]:
        hidden_dims.append(int(w.shape[1]))
        flat += [w.astype(mxu_dtype), b.reshape(1, -1).astype(jnp.float32)]
        in_specs += [pl.BlockSpec(tuple(w.shape), resident),
                     pl.BlockSpec((1, int(w.shape[1])), resident)]
        gammas.append(g.reshape(-1).astype(jnp.float32))
        betas.append(bt.reshape(-1).astype(jnp.float32))
    h_last = int(params["out_w"].shape[0])
    flat += [params["out_w"].astype(mxu_dtype),
             params["out_b"].reshape(1, -1).astype(jnp.float32)]
    in_specs += [pl.BlockSpec((h_last, output_dim), resident),
                 pl.BlockSpec((1, output_dim), resident)]
    flat += [jnp.stack(gammas), jnp.stack(betas)]               # (L, K) each
    in_specs += [pl.BlockSpec(memory_space=pltpu.MemorySpace.SMEM)] * 2

    out_specs = pl.BlockSpec((1, B, output_dim), lambda k: (k, 0, 0))

    # Advisory cost estimate so XLA schedules around the custom call sanely.
    flops, trans, in_d = 0, 0, E
    for h in hidden_dims:
        flops += K * (2 * B * in_d * h + 12 * B * h)
        trans += K * (2 * B * h)
        in_d = h
    flops += K * 2 * B * in_d * output_dim
    param_bytes = sum(int(a.size) * a.dtype.itemsize for a in flat)
    bytes_acc = (int(x_t.size) * x_t.dtype.itemsize
                 + B * K * output_dim * 4 + param_bytes)

    # VMEM budget: resident params + double-buffered in/out tiles + per-step
    # intermediates; clamp to ~60% of the generation's physical VMEM so the
    # same shapes that fit 128 MiB on v5e/v6e never overcommit v7x's 64 MiB.
    act_w = max([E, output_dim] + hidden_dims)
    itm = jnp.dtype(mxu_dtype).itemsize
    est = (param_bytes
           + 2 * B * E * itm + 2 * B * output_dim * 4          # pipelined tiles
           + 6 * B * act_w * 4)                                # intermediates
    try:
        vmem_cap = int(pltpu.get_tpu_info().vmem_capacity_bytes)
    except Exception:
        vmem_cap = 64 * 1024 * 1024                            # v7x floor
    vmem_limit = int(min(max(4 * est, 16 * 1024 * 1024), int(0.6 * vmem_cap)))

    # TODO(synk): for large B, sub-tile the batch inside each k with a two-pass
    # streaming BatchNorm (accumulate per-channel sum/sumsq across B tiles,
    # then normalize) so activations stream through VMEM; for very small B*H,
    # fold several neighbor channels per grid step to amortize the ~0.35us
    # per-step pipeline overhead.
    kernel = functools.partial(_edge_network_kernel, num_layers, eps,
                               approx_gelu, mxu_dtype)
    out_t = pl.pallas_call(
        kernel,
        grid=(K,),
        out_shape=jax.ShapeDtypeStruct((K, B, output_dim), jnp.float32),
        in_specs=in_specs,
        out_specs=out_specs,
        compiler_params=pltpu.CompilerParams(
            dimension_semantics=("parallel",),     # both v7x TensorCores
            vmem_limit_bytes=vmem_limit),
        cost_estimate=pl.CostEstimate(flops=int(flops),
                                      transcendentals=int(trans),
                                      bytes_accessed=int(bytes_acc)),
    )(x_t, *flat)
    return jnp.transpose(out_t, (1, 0, 2))


def init_params(key, edge_dim, hidden_dim, output_dim, num_layers,
                num_neighbors):
    """Deterministic init mirroring nn.Linear / nn.BatchNorm1d defaults."""
    def linear(key, fan_in, fan_out):
        kw, kb = jax.random.split(key)
        bound = 1.0 / math.sqrt(fan_in)
        w = jax.random.uniform(kw, (fan_in, fan_out), jnp.float32, -bound, bound)
        b = jax.random.uniform(kb, (fan_out,), jnp.float32, -bound, bound)
        return w, b

    keys = jax.random.split(key, num_layers + 1)
    hidden = []
    in_dim = edge_dim
    for i in range(num_layers):
        w, b = linear(keys[i], in_dim, hidden_dim)
        gamma = jnp.ones((num_neighbors,), jnp.float32)
        beta = jnp.zeros((num_neighbors,), jnp.float32)
        hidden.append((w, b, gamma, beta))
        in_dim = hidden_dim
    out_w, out_b = linear(keys[-1], hidden_dim, output_dim)
    return {"hidden": hidden, "out_w": out_w, "out_b": out_b}


def perturb_bn(params, key):
    """Randomize gamma/beta so the per-channel BN affine path is exercised."""
    new_hidden = []
    for i, (w, b, g, bt) in enumerate(params["hidden"]):
        kg, kb = jax.random.split(jax.random.fold_in(key, i))
        new_hidden.append((w, b,
                           g + 0.2 * jax.random.normal(kg, g.shape),
                           bt + 0.2 * jax.random.normal(kb, bt.shape)))
    return {**params, "hidden": new_hidden}


def edge_network_ref(x, params, eps=1e-5):
    """Pure-JAX reference of the PyTorch forward (training-mode BatchNorm)."""
    y = x
    for (w, b, g, bt) in params["hidden"]:
        y = _gelu(jnp.einsum("bke,eh->bkh", y, w) + b, False)
        mean = jnp.mean(y, axis=(0, 2), keepdims=True)
        var = jnp.mean((y - mean) ** 2, axis=(0, 2), keepdims=True)
        y = (y - mean) * jax.lax.rsqrt(var + eps)
        y = y * g.reshape(1, -1, 1) + bt.reshape(1, -1, 1)
        y = _gelu(y, False)
    return jnp.einsum("bkh,ho->bko", y, params["out_w"]) + params["out_b"]


if __name__ == "__main__":
    # --- Test 1: f32 MXU + exact-erf GELU -> tight PyTorch-equivalent match.
    batch, num_neighbors = 8, 8
    edge_dim, hidden_dim, output_dim, num_layers = 16, 32, 16, 2

    key = jax.random.PRNGKey(0)
    kx, kp, kbn = jax.random.split(key, 3)
    x = jax.random.normal(kx, (batch, num_neighbors, edge_dim), jnp.float32)
    params = perturb_bn(
        init_params(kp, edge_dim, hidden_dim, output_dim, num_layers,
                    num_neighbors), kbn)

    out = edge_network_forward(x, params, num_layers=num_layers,
                               output_dim=output_dim,
                               mxu_dtype=jnp.float32, approx_gelu=False)
    out = jax.block_until_ready(out)
    ref = edge_network_ref(x, params)
    assert out.shape == (batch, num_neighbors, output_dim)
    err = float(jnp.max(jnp.abs(out - ref)))
    assert jnp.allclose(out, ref, atol=1e-4, rtol=1e-4), f"max abs err {err}"

    # --- Test 2: non-multiple-of-8, non-toy-aligned shapes (row ordering and
    # true-width output validated away from the friendly 8/16/32 sizes).
    b2, k2, e2, h2, o2, l2 = 5, 3, 12, 20, 7, 3
    kx2, kp2, kbn2 = jax.random.split(jax.random.PRNGKey(1), 3)
    x2 = jax.random.normal(kx2, (b2, k2, e2), jnp.float32)
    p2 = perturb_bn(init_params(kp2, e2, h2, o2, l2, k2), kbn2)
    out2 = jax.block_until_ready(
        edge_network_forward(x2, p2, num_layers=l2, output_dim=o2,
                             mxu_dtype=jnp.float32, approx_gelu=False))
    ref2 = edge_network_ref(x2, p2)
    assert out2.shape == (b2, k2, o2)
    err2 = float(jnp.max(jnp.abs(out2 - ref2)))
    assert jnp.allclose(out2, ref2, atol=1e-4, rtol=1e-4), f"max abs err {err2}"

    # --- Test 3: fast path (bf16 MXU operands + tanh-GELU).  Loose tolerance
    # by design: a documented numerics decision, not drop-in equivalence.
    out_fast = jax.block_until_ready(
        edge_network_forward(x, params, num_layers=num_layers,
                             output_dim=output_dim,
                             mxu_dtype=jnp.bfloat16, approx_gelu=True))
    assert out_fast.shape == (batch, num_neighbors, output_dim)
    assert bool(jnp.all(jnp.isfinite(out_fast)))
    assert jnp.allclose(out_fast, ref, atol=2e-1, rtol=2e-1)

    print("KERNEL_OK")
</pallas_src>

<mosaic_0001>
module attributes {stable_mosaic.version = 11 : i64} {
  func.func @_edge_network_kernel(%arg0: i32, %arg1: memref<1x8x16xf32, #tpu.memory_space<vmem>>, %arg2: memref<16x32xf32, #tpu.memory_space<vmem>>, %arg3: memref<1x32xf32, #tpu.memory_space<vmem>>, %arg4: memref<32x32xf32, #tpu.memory_space<vmem>>, %arg5: memref<1x32xf32, #tpu.memory_space<vmem>>, %arg6: memref<32x16xf32, #tpu.memory_space<vmem>>, %arg7: memref<1x16xf32, #tpu.memory_space<vmem>>, %arg8: memref<2x8xf32, #tpu.memory_space<smem>>, %arg9: memref<2x8xf32, #tpu.memory_space<smem>>, %arg10: memref<1x8x16xf32, #tpu.memory_space<vmem>>) attributes {dimension_semantics = [#tpu.dimension_semantics<parallel>], iteration_bounds = array<i64: 8>, scalar_prefetch = 0 : i64, scratch_operands = 0 : i64, tpu.core_type = #tpu.core_type<tc>, window_params = [{transform_indices = @transform_0, window_bounds = array<i64: 1, 8, 16>}, {pipeline_mode = #tpu.pipeline_mode<synchronous>, transform_indices = @transform_1, window_bounds = array<i64: 16, 32>}, {pipeline_mode = #tpu.pipeline_mode<synchronous>, transform_indices = @transform_2, window_bounds = array<i64: 1, 32>}, {pipeline_mode = #tpu.pipeline_mode<synchronous>, transform_indices = @transform_3, window_bounds = array<i64: 32, 32>}, {pipeline_mode = #tpu.pipeline_mode<synchronous>, transform_indices = @transform_4, window_bounds = array<i64: 1, 32>}, {pipeline_mode = #tpu.pipeline_mode<synchronous>, transform_indices = @transform_5, window_bounds = array<i64: 32, 16>}, {pipeline_mode = #tpu.pipeline_mode<synchronous>, transform_indices = @transform_6, window_bounds = array<i64: 1, 16>}, {transform_indices = @transform_7, window_bounds = array<i64: 2, 8>}, {transform_indices = @transform_8, window_bounds = array<i64: 2, 8>}, {transform_indices = @transform_9, window_bounds = array<i64: 1, 8, 16>}]} {
    %c0 = arith.constant 0 : index
    %c0_0 = arith.constant 0 : index
    %c0_1 = arith.constant 0 : index
    %0 = vector.load %arg1[%c0, %c0_0, %c0_1] : memref<1x8x16xf32, #tpu.memory_space<vmem>>, vector<1x8x16xf32>
    %1 = vector.shape_cast %0 : vector<1x8x16xf32> to vector<8x16xf32>
    %c0_2 = arith.constant 0 : index
    %c0_3 = arith.constant 0 : index
    %2 = vector.load %arg2[%c0_2, %c0_3] : memref<16x32xf32, #tpu.memory_space<vmem>>, vector<16x32xf32>
    %c0_4 = arith.constant 0 : index
    %c0_5 = arith.constant 0 : index
    %3 = vector.load %arg3[%c0_4, %c0_5] : memref<1x32xf32, #tpu.memory_space<vmem>>, vector<1x32xf32>
    %cst = arith.constant dense<0.000000e+00> : vector<8x32xf32>
    %4 = tpu.matmul %1, %2, %cst {dimension_numbers = #tpu.dot_dimension_numbers<[1], [0], [0], [1], [0, 0, 1, 1], [], []>} : vector<8x16xf32>, vector<16x32xf32>, vector<8x32xf32> -> vector<8x32xf32>
    %5 = vector.broadcast %3 : vector<1x32xf32> to vector<8x32xf32>
    %6 = arith.addf %4, %5 : vector<8x32xf32>
    %cst_6 = arith.constant 5.000000e-01 : f32
    %7 = vector.broadcast %cst_6 : f32 to vector<8x32xf32>
    %8 = arith.mulf %7, %6 : vector<8x32xf32>
    %cst_7 = arith.constant 0.707106769 : f32
    %9 = vector.broadcast %cst_7 : f32 to vector<8x32xf32>
    %10 = arith.mulf %6, %9 : vector<8x32xf32>
    %11 = math.erf %10 : vector<8x32xf32>
    %cst_8 = arith.constant 1.000000e+00 : f32
    %12 = vector.broadcast %cst_8 : f32 to vector<8x32xf32>
    %13 = arith.addf %12, %11 : vector<8x32xf32>
    %14 = arith.mulf %8, %13 : vector<8x32xf32>
    %cst_9 = arith.constant dense<0.000000e+00> : vector<8xf32>
    %15 = vector.multi_reduction <add>, %14, %cst_9 [1] : vector<8x32xf32> to vector<8xf32>
    %16 = vector.shape_cast %15 : vector<8xf32> to vector<8x1xf32>
    %cst_10 = arith.constant dense<0.000000e+00> : vector<1xf32>
    %17 = vector.multi_reduction <add>, %16, %cst_10 [0] : vector<8x1xf32> to vector<1xf32>
    %18 = vector.shape_cast %17 : vector<1xf32> to vector<1x1xf32>
    %cst_11 = arith.constant 3.906250e-03 : f32
    %19 = vector.broadcast %cst_11 : f32 to vector<1x1xf32>
    %20 = arith.mulf %18, %19 : vector<1x1xf32>
    %21 = vector.broadcast %20 : vector<1x1xf32> to vector<8x32xf32>
    %22 = arith.subf %14, %21 : vector<8x32xf32>
    %23 = arith.mulf %22, %22 : vector<8x32xf32>
    %cst_12 = arith.constant dense<0.000000e+00> : vector<8xf32>
    %24 = vector.multi_reduction <add>, %23, %cst_12 [1] : vector<8x32xf32> to vector<8xf32>
    %25 = vector.shape_cast %24 : vector<8xf32> to vector<8x1xf32>
    %cst_13 = arith.constant dense<0.000000e+00> : vector<1xf32>
    %26 = vector.multi_reduction <add>, %25, %cst_13 [0] : vector<8x1xf32> to vector<1xf32>
    %27 = vector.shape_cast %26 : vector<1xf32> to vector<1x1xf32>
    %cst_14 = arith.constant 3.906250e-03 : f32
    %28 = vector.broadcast %cst_14 : f32 to vector<1x1xf32>
    %29 = arith.mulf %27, %28 : vector<1x1xf32>
    %c0_15 = arith.constant 0 : index
    %30 = arith.index_cast %arg0 : i32 to index
    %31 = memref.load %arg8[%c0_15, %30] : memref<2x8xf32, #tpu.memory_space<smem>>
    %cst_16 = arith.constant 9.99999974E-6 : f32
    %32 = vector.broadcast %cst_16 : f32 to vector<1x1xf32>
    %33 = arith.addf %29, %32 : vector<1x1xf32>
    %34 = math.rsqrt %33 : vector<1x1xf32>
    %35 = vector.broadcast %31 : f32 to vector<1x1xf32>
    %36 = arith.mulf %35, %34 : vector<1x1xf32>
    %37 = vector.broadcast %36 : vector<1x1xf32> to vector<8x32xf32>
    %38 = arith.mulf %22, %37 : vector<8x32xf32>
    %c0_17 = arith.constant 0 : index
    %39 = arith.index_cast %arg0 : i32 to index
    %40 = memref.load %arg9[%c0_17, %39] : memref<2x8xf32, #tpu.memory_space<smem>>
    %41 = vector.broadcast %40 : f32 to vector<8x32xf32>
    %42 = arith.addf %38, %41 : vector<8x32xf32>
    %cst_18 = arith.constant 5.000000e-01 : f32
    %43 = vector.broadcast %cst_18 : f32 to vector<8x32xf32>
    %44 = arith.mulf %43, %42 : vector<8x32xf32>
    %cst_19 = arith.constant 0.707106769 : f32
    %45 = vector.broadcast %cst_19 : f32 to vector<8x32xf32>
    %46 = arith.mulf %42, %45 : vector<8x32xf32>
    %47 = math.erf %46 : vector<8x32xf32>
    %cst_20 = arith.constant 1.000000e+00 : f32
    %48 = vector.broadcast %cst_20 : f32 to vector<8x32xf32>
    %49 = arith.addf %48, %47 : vector<8x32xf32>
    %50 = arith.mulf %44, %49 : vector<8x32xf32>
    %c0_21 = arith.constant 0 : index
    %c0_22 = arith.constant 0 : index
    %51 = vector.load %arg4[%c0_21, %c0_22] : memref<32x32xf32, #tpu.memory_space<vmem>>, vector<32x32xf32>
    %c0_23 = arith.constant 0 : index
    %c0_24 = arith.constant 0 : index
    %52 = vector.load %arg5[%c0_23, %c0_24] : memref<1x32xf32, #tpu.memory_space<vmem>>, vector<1x32xf32>
    %cst_25 = arith.constant dense<0.000000e+00> : vector<8x32xf32>
    %53 = tpu.matmul %50, %51, %cst_25 {dimension_numbers = #tpu.dot_dimension_numbers<[1], [0], [0], [1], [0, 0, 1, 1], [], []>} : vector<8x32xf32>, vector<32x32xf32>, vector<8x32xf32> -> vector<8x32xf32>
    %54 = vector.broadcast %52 : vector<1x32xf32> to vector<8x32xf32>
    %55 = arith.addf %53, %54 : vector<8x32xf32>
    %cst_26 = arith.constant 5.000000e-01 : f32
    %56 = vector.broadcast %cst_26 : f32 to vector<8x32xf32>
    %57 = arith.mulf %56, %55 : vector<8x32xf32>
    %cst_27 = arith.constant 0.707106769 : f32
    %58 = vector.broadcast %cst_27 : f32 to vector<8x32xf32>
    %59 = arith.mulf %55, %58 : vector<8x32xf32>
    %60 = math.erf %59 : vector<8x32xf32>
    %cst_28 = arith.constant 1.000000e+00 : f32
    %61 = vector.broadcast %cst_28 : f32 to vector<8x32xf32>
    %62 = arith.addf %61, %60 : vector<8x32xf32>
    %63 = arith.mulf %57, %62 : vector<8x32xf32>
    %cst_29 = arith.constant dense<0.000000e+00> : vector<8xf32>
    %64 = vector.multi_reduction <add>, %63, %cst_29 [1] : vector<8x32xf32> to vector<8xf32>
    %65 = vector.shape_cast %64 : vector<8xf32> to vector<8x1xf32>
    %cst_30 = arith.constant dense<0.000000e+00> : vector<1xf32>
    %66 = vector.multi_reduction <add>, %65, %cst_30 [0] : vector<8x1xf32> to vector<1xf32>
    %67 = vector.shape_cast %66 : vector<1xf32> to vector<1x1xf32>
    %cst_31 = arith.constant 3.906250e-03 : f32
    %68 = vector.broadcast %cst_31 : f32 to vector<1x1xf32>
    %69 = arith.mulf %67, %68 : vector<1x1xf32>
    %70 = vector.broadcast %69 : vector<1x1xf32> to vector<8x32xf32>
    %71 = arith.subf %63, %70 : vector<8x32xf32>
    %72 = arith.mulf %71, %71 : vector<8x32xf32>
    %cst_32 = arith.constant dense<0.000000e+00> : vector<8xf32>
    %73 = vector.multi_reduction <add>, %72, %cst_32 [1] : vector<8x32xf32> to vector<8xf32>
    %74 = vector.shape_cast %73 : vector<8xf32> to vector<8x1xf32>
    %cst_33 = arith.constant dense<0.000000e+00> : vector<1xf32>
    %75 = vector.multi_reduction <add>, %74, %cst_33 [0] : vector<8x1xf32> to vector<1xf32>
    %76 = vector.shape_cast %75 : vector<1xf32> to vector<1x1xf32>
    %cst_34 = arith.constant 3.906250e-03 : f32
    %77 = vector.broadcast %cst_34 : f32 to vector<1x1xf32>
    %78 = arith.mulf %76, %77 : vector<1x1xf32>
    %c1 = arith.constant 1 : index
    %79 = arith.index_cast %arg0 : i32 to index
    %80 = memref.load %arg8[%c1, %79] : memref<2x8xf32, #tpu.memory_space<smem>>
    %cst_35 = arith.constant 9.99999974E-6 : f32
    %81 = vector.broadcast %cst_35 : f32 to vector<1x1xf32>
    %82 = arith.addf %78, %81 : vector<1x1xf32>
    %83 = math.rsqrt %82 : vector<1x1xf32>
    %84 = vector.broadcast %80 : f32 to vector<1x1xf32>
    %85 = arith.mulf %84, %83 : vector<1x1xf32>
    %86 = vector.broadcast %85 : vector<1x1xf32> to vector<8x32xf32>
    %87 = arith.mulf %71, %86 : vector<8x32xf32>
    %c1_36 = arith.constant 1 : index
    %88 = arith.index_cast %arg0 : i32 to index
    %89 = memref.load %arg9[%c1_36, %88] : memref<2x8xf32, #tpu.memory_space<smem>>
    %90 = vector.broadcast %89 : f32 to vector<8x32xf32>
    %91 = arith.addf %87, %90 : vector<8x32xf32>
    %cst_37 = arith.constant 5.000000e-01 : f32
    %92 = vector.broadcast %cst_37 : f32 to vector<8x32xf32>
    %93 = arith.mulf %92, %91 : vector<8x32xf32>
    %cst_38 = arith.constant 0.707106769 : f32
    %94 = vector.broadcast %cst_38 : f32 to vector<8x32xf32>
    %95 = arith.mulf %91, %94 : vector<8x32xf32>
    %96 = math.erf %95 : vector<8x32xf32>
    %cst_39 = arith.constant 1.000000e+00 : f32
    %97 = vector.broadcast %cst_39 : f32 to vector<8x32xf32>
    %98 = arith.addf %97, %96 : vector<8x32xf32>
    %99 = arith.mulf %93, %98 : vector<8x32xf32>
    %c0_40 = arith.constant 0 : index
    %c0_41 = arith.constant 0 : index
    %100 = vector.load %arg6[%c0_40, %c0_41] : memref<32x16xf32, #tpu.memory_space<vmem>>, vector<32x16xf32>
    %cst_42 = arith.constant dense<0.000000e+00> : vector<8x16xf32>
    %101 = tpu.matmul %99, %100, %cst_42 {dimension_numbers = #tpu.dot_dimension_numbers<[1], [0], [0], [1], [0, 0, 1, 1], [], []>} : vector<8x32xf32>, vector<32x16xf32>, vector<8x16xf32> -> vector<8x16xf32>
    %c0_43 = arith.constant 0 : index
    %c0_44 = arith.constant 0 : index
    %102 = vector.load %arg7[%c0_43, %c0_44] : memref<1x16xf32, #tpu.memory_space<vmem>>, vector<1x16xf32>
    %103 = vector.broadcast %102 : vector<1x16xf32> to vector<8x16xf32>
    %104 = arith.addf %101, %103 : vector<8x16xf32>
    %c0_45 = arith.constant 0 : index
    %c0_46 = arith.constant 0 : index
    %c0_47 = arith.constant 0 : index
    %105 = vector.load %arg10[%c0_45, %c0_46, %c0_47] : memref<1x8x16xf32, #tpu.memory_space<vmem>>, vector<1x8x16xf32>
    %106 = vector.shape_cast %105 : vector<1x8x16xf32> to vector<8x16xf32>
    %107 = vector.shape_cast %104 : vector<8x16xf32> to vector<1x8x16xf32>
    tpu.vector_store %arg10[%c0_45, %c0_46, %c0_47], %107 {strides = array<i32>} : memref<1x8x16xf32, #tpu.memory_space<vmem>>, vector<1x8x16xf32>,
    return
  }
  func.func @transform_0(%arg0: i32) -> (i32, i32, i32) {
    %c0_i32 = arith.constant 0 : i32
    %c0_i32_0 = arith.constant 0 : i32
    %c0_i32_1 = arith.constant 0 : i32
    return %arg0, %c0_i32, %c0_i32_0 : i32, i32, i32
  }
  func.func @transform_1(%arg0: i32) -> (i32, i32) {
    %c0_i32 = arith.constant 0 : i32
    %c0_i32_0 = arith.constant 0 : i32
    %c0_i32_1 = arith.constant 0 : i32
    return %c0_i32, %c0_i32_0 : i32, i32
  }
  func.func @transform_2(%arg0: i32) -> (i32, i32) {
    %c0_i32 = arith.constant 0 : i32
    %c0_i32_0 = arith.constant 0 : i32
    %c0_i32_1 = arith.constant 0 : i32
    return %c0_i32, %c0_i32_0 : i32, i32
  }
  func.func @transform_3(%arg0: i32) -> (i32, i32) {
    %c0_i32 = arith.constant 0 : i32
    %c0_i32_0 = arith.constant 0 : i32
    %c0_i32_1 = arith.constant 0 : i32
    return %c0_i32, %c0_i32_0 : i32, i32
  }
  func.func @transform_4(%arg0: i32) -> (i32, i32) {
    %c0_i32 = arith.constant 0 : i32
    %c0_i32_0 = arith.constant 0 : i32
    %c0_i32_1 = arith.constant 0 : i32
    return %c0_i32, %c0_i32_0 : i32, i32
  }
  func.func @transform_5(%arg0: i32) -> (i32, i32) {
    %c0_i32 = arith.constant 0 : i32
    %c0_i32_0 = arith.constant 0 : i32
    %c0_i32_1 = arith.constant 0 : i32
    return %c0_i32, %c0_i32_0 : i32, i32
  }
  func.func @transform_6(%arg0: i32) -> (i32, i32) {
    %c0_i32 = arith.constant 0 : i32
    %c0_i32_0 = arith.constant 0 : i32
    %c0_i32_1 = arith.constant 0 : i32
    return %c0_i32, %c0_i32_0 : i32, i32
  }
  func.func @transform_7(%arg0: i32) -> (i32, i32) {
    %c0_i32 = arith.constant 0 : i32
    %c0_i32_0 = arith.constant 0 : i32
    %c0_i32_1 = arith.constant 0 : i32
    return %c0_i32, %c0_i32_0 : i32, i32
  }
  func.func @transform_8(%arg0: i32) -> (i32, i32) {
    %c0_i32 = arith.constant 0 : i32
    %c0_i32_0 = arith.constant 0 : i32
    %c0_i32_1 = arith.constant 0 : i32
    return %c0_i32, %c0_i32_0 : i32, i32
  }
  func.func @transform_9(%arg0: i32) -> (i32, i32, i32) {
    %c0_i32 = arith.constant 0 : i32
    %c0_i32_0 = arith.constant 0 : i32
    %c0_i32_1 = arith.constant 0 : i32
    return %arg0, %c0_i32, %c0_i32_0 : i32, i32, i32
  }
}

</mosaic_0001>

<bundles_post_ra>
// kernel: tpu_custom_call.1
= control target key start
LH: loop header
LB: loop body
LE: loop exit
PB: predicated region body
PF: predicated region fallthrough
CT: control target
= control target key end

     0   :  { %s1634_s0 = inlined_call_operand.hbm [shape: f32[8,8,16], index: 0, kind: input, shape index: {}]   ;;  %s1635_s1 = inlined_call_operand.vmem [shape: f32[16,32], index: 1, kind: input, shape index: {}]   ;;  %s1636_s2 = inlined_call_operand.hbm [shape: f32[1,32], index: 2, kind: input, shape index: {}]   ;;  %s1637_s3 = inlined_call_operand.vmem [shape: f32[32,32], index: 3, kind: input, shape index: {}]   ;;  %s1638_s4 = inlined_call_operand.hbm [shape: f32[1,32], index: 4, kind: input, shape index: {}]   ;;  %s1639_s5 = inlined_call_operand.vmem [shape: f32[32,16], index: 5, kind: input, shape index: {}]   ;;  %s1640_s6 = inlined_call_operand.vmem [shape: f32[1,16], index: 6, kind: input, shape index: {}]   ;;  %s1641_s7 = inlined_call_operand.vmem [shape: f32[2,8], index: 7, kind: input, shape index: {}]   ;;  %s1642_s8 = inlined_call_operand.vmem [shape: f32[2,8], index: 8, kind: input, shape index: {}]   ;;  %s1643_s9 = inlined_call_operand.hbm [shape: f32[8,8,16], index: 9, kind: output, shape index: {}]  }
   0x1   :  { %1647 = sst [smem:[#allocation18_spill]] %s1636_s2 }
   0x2   :  { %1648 = sst [smem:[#allocation19_spill]] %s1638_s4 }
   0x3   :  { %14 = vsyncpa [#allocation3], 0 }
   0x4   :  { %16 = vsyncpa [#allocation3 + $0x1], 0 }
   0x5   :  { %17 = vsyncpa [#allocation7], 0 }
   0x6   :  { %18 = vsyncpa [#allocation5], 0 }
   0x7   :  { %19 = vsyncpa [#allocation11], 0 }
   0x8   :  { %20 = vsyncpa [#allocation4], 0 }
   0x9   :  { %22 = vsyncpa [#allocation4 + $0x1], 0  ;;  %s1311_s30 = smov 0   ;;  %s1313_s10 = smov 0  }
   0xa   :  { %s1315_s11 = smov 0   ;;  %s1317_s12 = smov 0  }
   0xb LB: > { %s1252_s13 = smov [#allocation6]   ;;  %s1332_s15 = sadd.s32 4294967295, %s1250_s12   ;;  %s1250_s12 = sphi %s1317_s12, %s1671_s12   ;;  %s1246_s11 = sphi %s1315_s11, %s1670_s11   ;;  %s1242_s10 = sphi %s1313_s10, %s1669_s10   ;;  %s1238_s30 = sphi %s1311_s30, %s1668_s30  }
   0xc   : > { %s269_s14 = sshll.u32 %s1252_s13, 4  ;;  %p869_p0 = scmp.ge.s32.totalorder %s1250_s12, 1  ;;  %s1337_s14 = int_to_ptr.vmem [resolvable:$true] %s269_s14 }
   0xd   : > { %p1644_p1 = scmp.eq.s32.totalorder %s1332_s15, 0  ;;  %p253_p2 = scmp.lt.s32.totalorder %s1250_s12, 9 }
   0xe   : > { %s300_s19 = sshll.u32 %s1641_s7, 4  ;;  %s1253_s20 = smov [#allocation8]   ;;  %s1350_s19 = int_to_ptr.vmem [resolvable:$true] %s300_s19 }
   0xf   : > { %p1339_p3 = pnand %p869_p0, %p253_p2  ;;  %s283_s21 = sshll.u32 %s1253_s20, 4  ;;  %s1348_s21 = int_to_ptr.vmem [resolvable:$true] %s283_s21 }
  0x10   : > { %s311_s25 = sshll.u32 %s1642_s8, 4  ;;  %s1651_s2 = sld [smem:[#allocation18_spill]]  ;;  %s1361_s25 = int_to_ptr.vmem [resolvable:$true] %s311_s25 }
  0x11   : > { %p974_p4 = pneg %p1339_p3 }
  0x13   : > { %p1354_p5 = pnand %p974_p4, %p1644_p1 }
  0x15   : > { %p1371_p7 = pneg %p1354_p5 }
  0x16   : > { %s1056_s28 = scalar_lea.hbm %s1651_s2, 16 }
  0x17   : > { %p1057_p6 = scmp.ne.s32.totalorder %s1651_s2, %s1056_s28  ;;  %p1063_p10 = scmp.lt.u32.totalorder %s1056_s28, %s1651_s2 }
  0x19   : > { %p1059_p8 = pnand %p1371_p7, %p1057_p6 }
  0x1b   : > { %p1060_p9 = pneg %p1059_p8 }
  0x1d   : > { %p1065_p11 = pnand %p1063_p10, %p1060_p9 }
  0x1f   : > { %1068 = shalt.err (!%p1065_p11)
}
  0x20   : > { %s1069_s23 = scalar_lea.vmem %s1337_s14, 16  ;;  %s1076_s24 = scalar_lea.vmem %s1337_s14, 32 }
  0x21   : > { %p1070_p12 = scmp.ne.s32.totalorder %s1337_s14, %s1069_s23  ;;  %p1077_p2 = scmp.lt.s32.totalorder %s1337_s14, %s1337_s14 }
  0x22   : > { %p1078_p4 = scmp.lt.s32.totalorder %s1076_s24, %s1069_s23 }
  0x23   : > { %p1072_p13 = pnand %p1070_p12, %p1371_p7 }
  0x24   : > { %p1079_p6 = por %p1078_p4, %p1077_p2 }
  0x25   : > { %p1073_p0 = pneg %p1072_p13 }
  0x27   : > { %p1080_p8 = pnand %p1079_p6, %p1073_p0 }
  0x29   : > { %1083 = shalt.err (!%p1080_p8)
}
  0x2a   : > { %977 = dma.hbm_to_vmem [thread:$0]  (!%p1354_p5), %s1651_s2, 16, %s1337_s14, [#allocation7]  }
  0x2b   : > { %s1653_s4 = sld [smem:[#allocation19_spill]] }
  0x31   : > { %s1084_s13 = scalar_lea.hbm %s1653_s4, 16 }
  0x32   : > { %p1085_p9 = scmp.ne.s32.totalorder %s1653_s4, %s1084_s13  ;;  %p1091_p12 = scmp.lt.u32.totalorder %s1084_s13, %s1653_s4 }
  0x34   : > { %p1087_p10 = pnand %p1085_p9, %p1371_p7 }
  0x36   : > { %p1088_p11 = pneg %p1087_p10 }
  0x38   : > { %p1093_p13 = pnand %p1091_p12, %p1088_p11 }
  0x3a   : > { %1096 = shalt.err (!%p1093_p13)
}
  0x3b   : > { %s1097_s14 = scalar_lea.vmem %s1348_s21, 16  ;;  %s1104_s26 = scalar_lea.vmem %s1348_s21, 32 }
  0x3c   : > { %p1098_p0 = scmp.ne.s32.totalorder %s1348_s21, %s1097_s14  ;;  %p1105_p6 = scmp.lt.s32.totalorder %s1348_s21, %s1348_s21 }
  0x3d   : > { %p1106_p8 = scmp.lt.s32.totalorder %s1104_s26, %s1097_s14 }
  0x3e   : > { %p1100_p2 = pnand %p1098_p0, %p1371_p7 }
  0x3f   : > { %p1107_p9 = por %p1106_p8, %p1105_p6 }
  0x40   : > { %p1101_p4 = pneg %p1100_p2 }
  0x42   : > { %p1108_p10 = pnand %p1107_p9, %p1101_p4 }
  0x44   : > { %1111 = shalt.err (!%p1108_p10)
}
  0x45   : > { %980 = dma.hbm_to_vmem [thread:$0]  (!%p1354_p5), %s1653_s4, 16, %s1348_s21, [#allocation7]  }
  0x46   : > { %s1112_s29 = scalar_lea.vmem %s1350_s19, 32  ;;  %p1120_p0 = scmp.lt.s32.totalorder %s1350_s19, %s1350_s19 }
  0x47   : > { %p1113_p11 = scmp.ne.s32.totalorder %s1350_s19, %s1112_s29  ;;  %p1121_p2 = scmp.lt.s32.totalorder %s1112_s29, %s1112_s29 }
  0x49   : > { %p1115_p12 = pnand %p1113_p11, %p1371_p7  ;;  %p1122_p4 = por %p1121_p2, %p1120_p0 }
  0x4b   : > { %p1116_p13 = pneg %p1115_p12 }
  0x4d   : > { %p1123_p6 = pnand %p1122_p4, %p1116_p13 }
  0x4f   : > { %1126 = shalt.err (!%p1123_p6)
}
  0x50   : > { %s1254_s13 = smov [#allocation9]   ;;  %s1127_s21 = scalar_lea.vmem %s1361_s25, 32 }
  0x51   : > { %983 = dma.vmem_to_smem (!%p1354_p5), %s1350_s19, 32, %s1254_s13, [#allocation5]  }
  0x52   : > { %p1128_p8 = scmp.ne.s32.totalorder %s1361_s25, %s1127_s21  ;;  %p1135_p11 = scmp.lt.s32.totalorder %s1361_s25, %s1361_s25 }
  0x53   : > { %p1136_p12 = scmp.lt.s32.totalorder %s1127_s21, %s1127_s21 }
  0x54   : > { %p1130_p9 = pnand %p1128_p8, %p1371_p7 }
  0x55   : > { %p1137_p0 = por %p1136_p12, %p1135_p11 }
  0x56   : > { %p1131_p10 = pneg %p1130_p9 }
  0x58   : > { %p1138_p13 = pnand %p1137_p0, %p1131_p10 }
  0x5a   : > { %1141 = shalt.err (!%p1138_p13)
}
  0x5b   : > { %s1255_s18 = smov [#allocation10]   ;;  %s868_s19 = sadd.s32 4294967294, %s1250_s12  }
  0x5c   : > { %986 = dma.vmem_to_smem (!%p1354_p5), %s1361_s25, 32, %s1255_s18, [#allocation11]  }
  0x5d   : > { %s1437_s17 = sadd.s32 1, %s1250_s12   ;;  %s35_s20 = sadd.s32 1, %s1246_s11 }
  0x5e   : > { %s32_s22 = ssub.s32 %s1250_s12, %s1437_s17  ;;  %p42_p2 = scmp.ne.s32.totalorder %s1246_s11, %s1242_s10 }
  0x5f   : > { %p33_p7 = scmp.eq.s32.totalorder %s32_s22, 0  ;;  %p43_p4 = scmp.eq.s32.totalorder %s1250_s12, 0 }
  0x60   : > { %p48_p6 = scmp.ne.s32.totalorder %s1242_s10, %s1238_s30  ;;  %p240_p9 = scmp.eq.s32.totalorder %s1332_s15, 7 }
  0x61   : > { %s1448_s23 = scalar_select %p33_p7, %s1246_s11, %s35_s20  }
  0x62   : > { %p1450_p8 = por %p43_p4, %p42_p2  ;;  %p1456_p5 = por %p1644_p1, %p48_p6 }
  0x63   : > { %p246_p10 = scmp.eq.s32.totalorder %s868_s19, 7  ;;  %p999_p11 = scmp.lt.s32.totalorder %s1250_s12, 8 }
  0x64   : > { %s1655_s25 = scalar_select %p1456_p5, 1, 0 }
  0x65   : > { %s322_s14 = sand.u32 1, %s1246_s11   ;;  %p1463_p12 = por %p240_p9, %p42_p2 }
  0x66   : > { %p1467_p0 = por %p246_p10, %p48_p6  ;;  %s875_s28 = sshll.u32 %s322_s14, 3 }
  0x67   : > { %s1656_s26 = scalar_select %p1463_p12, 1, 0 }
  0x68   : > { %s1657_s27 = scalar_select %p1467_p0, 1, 0 }
  0x69   : > { %s876_s29 = sshll.u32 %s1250_s12, 7  ;;  %s326_s19 = scalar_lea.vmem [#allocation2], %s875_s28 }
  0x6a   : > { %s1475_s18 = scalar_lea.hbm %s1634_s0, %s876_s29  ;;  %s333_s22 = sshll.u32 %s326_s19, 4  ;;  %s1477_s22 = int_to_ptr.vmem [resolvable:$true] %s333_s22 }
  0x6b   : > { %p1481_p13 = pnand %p999_p11, %p1450_p8  ;;  %s323_s2 = scalar_lea.sflag [#allocation3], %s322_s14 }
  0x6c   : > { %s1142_s4 = scalar_lea.hbm %s1475_s18, 128  ;;  %s1147_s13 = scalar_lea.hbm %s1634_s0, 1024 }
  0x6d   : > { %p1143_p7 = scmp.ne.s32.totalorder %s1475_s18, %s1142_s4  ;;  %p1144_p2 = pneg %p1481_p13 }
  0x6e   : > { %p1148_p8 = scmp.lt.u32.totalorder %s1475_s18, %s1634_s0  ;;  %p1149_p9 = scmp.lt.u32.totalorder %s1147_s13, %s1142_s4 }
  0x6f   : > { %p1145_p4 = pnand %p1144_p2, %p1143_p7  ;;  %p1151_p11 = scmp.lt.u32.totalorder %s1142_s4, %s1475_s18 }
  0x70   : > { %p1150_p10 = por %p1149_p9, %p1148_p8 }
  0x71   : > { %p1146_p6 = pneg %p1145_p4 }
  0x72   : > { %p1152_p1 = por %p1151_p11, %p1150_p10 }
  0x74   : > { %p1153_p0 = pnand %p1152_p1, %p1146_p6 }
  0x76   : > { %1156 = shalt.err (!%p1153_p0)
}
  0x77   : > { %s1157_s14 = scalar_lea.vmem %s1477_s22, 128  ;;  %s1256_s19 = smov [#allocation2]  }
  0x78   : > { %p1158_p7 = scmp.ne.s32.totalorder %s1477_s22, %s1157_s14  ;;  %s1162_s28 = sshll.u32 %s1256_s19, 4  ;;  %s1163_s28 = int_to_ptr.vmem [resolvable:$false] %s1162_s28 }
  0x79   : > { %s1164_s29 = scalar_lea.vmem %s1163_s28, 256  ;;  %p1165_p5 = scmp.lt.s32.totalorder %s1477_s22, %s1163_s28 }
  0x7a   : > { %p1160_p4 = pnand %p1158_p7, %p1144_p2  ;;  %p1166_p8 = scmp.lt.s32.totalorder %s1164_s29, %s1157_s14 }
  0x7c   : > { %p1161_p12 = pneg %p1160_p4  ;;  %p1167_p9 = por %p1166_p8, %p1165_p5 }
  0x7e   : > { %p1168_p10 = pnand %p1167_p9, %p1161_p12 }
  0x80   : > { %1171 = shalt.err (!%p1168_p10)
}
  0x81   : > { %990 = dma.hbm_to_vmem [thread:$0]  (!%p1481_p13), %s1475_s18, 128, %s1477_s22, %s323_s2  }
  0x82   : > { %342 = sbr.rel (%p1339_p3) target bundleno = 1554 (0x612), region = 56  ;;  %s1513_s4 = sand.u32 (!%p1339_p3), 1, %s1242_s10  }
  0x83   : > { %s878_s13 = sshll.u32 (!%p1339_p3), %s1513_s4, 3  ;;  %s345_s24 = scalar_lea.sflag (!%p1339_p3), [#allocation3], %s1513_s4 }
  0x84   : > { %s348_s21 = scalar_lea.vmem (!%p1339_p3), [#allocation2], %s878_s13  ;;  %p1659_p1 = scmp.ne.s32.totalorder (!%p1339_p3), %s1655_s25, 0 }
  0x89   : > { %1217 = dma.done.wait (%p1659_p1), %s345_s24, 128  }
  0x8a   : > { %1219 = vsyncadd (%p1659_p1), %s345_s24, 4294967168  ;;  %p1660_p5 = scmp.eq.s32.totalorder %s1332_s15, 0 }
  0x8c   : > { %1221 = dma.done.wait (%p1660_p5), [#allocation7], 32   ;;  %p1661_p3 = pmov %p1660_p5 }
  0x8e   : > { %1223 = vsyncadd (%p1661_p3), [#allocation7], 4294967264  ;;  %p1662_p12 = pmov %p1661_p3 }
  0x8f   : > { %p1663_p0 = pmov %p1661_p3 }
  0x90   : > { %1225 = dma.done.wait (%p1662_p12), [#allocation5], 32  }
  0x91   : > { %1227 = vsyncadd (%p1663_p0), [#allocation5], 4294967264  ;;  %p1664_p13 = pmov %p1663_p0 }
  0x92   : > { %p1665_p2 = pmov %p1663_p0 }
  0x93   : > { %1229 = dma.done.wait (%p1664_p13), [#allocation11], 32  }
  0x94   : > { %1231 = vsyncadd (%p1665_p2), [#allocation11], 4294967264 }
  0x95   : > { %369 = sfence }
  0x96   : > { %v401_v0 = vld [vmem:[%s1635_s1] sm:$0xff]  ;;  %v402_v1 = vld [vmem:[%s1635_s1 + $0x8] sm:$0xff]  ;;  %v1257_v2 = vmov 0.0|0.0   ;;  %vm1258_vm0 = vmmov 0   ;;  %v1259_v4 = vmov 0.0   ;;  %vm410_vm1 = vcmask 130048  }
  0x97   : > { %939 = vmatprep.subr.bf16.mxu0 %v1257_v2  ;;  %v940_v3 = vpack.c.bf16 %v402_v1, %v401_v0  ;;  %914 = vmatprep.mubr.msk.f32.mxu0 %vm1258_vm0, %v1259_v4  ;;  %v400_v5 = vld [vmem:[%s348_s21] sm:$0xff]  ;;  %v884_v6 = vld [vmem:[#allocation6] ss:$0 sm:$0xff]  ;;  %vm489_vm2 = vcmask 261120   ;;  %v529_v31 = vld [vmem:[%s1637_s3 + $0x18] sm:$0xff]  ;;  %s512_s2 = sld [smem:[#allocation9 + %s1332_s15]] }
  0x98   : > { %942 = vmatprep.subr.bf16.mxu1 %v1257_v2  ;;  %925 = vmatprep.mubr.msk.f32.mxu1 %vm1258_vm0, %v1259_v4  ;;  %v526_v27 = vld [vmem:[%s1637_s3] sm:$0xff]  ;;  %v527_v28 = vld [vmem:[%s1637_s3 + $0x8] sm:$0xff]  ;;  %v528_v29 = vld [vmem:[%s1637_s3 + $0x10] sm:$0xff]  ;;  %s518_s16 = sld [smem:[#allocation10 + %s1332_s15]]  ;;  %s637_s24 = sshra.s32 %s1332_s15, 7 }
  0x99   : > { %941 = vmatpush3.bf16.msra.mxu0 %v940_v3  ;;  %v943_v30 = vpack.c.bf16 %v527_v28, %v526_v27  ;;  %v946_v32 = vpack.c.bf16 %v529_v31, %v528_v29  ;;  %v886_v53 = vld [vmem:[#allocation8] ss:$0 sm:$0xff]  ;;  %s895_s21 = sshll.u32 %s637_s24, 7  ;;  %s892_s19 = sshll.u32 %s1332_s15, 7 }
  0x9a   : > { %948 = vmatprep.subr.bf16.mxu0 %v1257_v2  ;;  %s399_s28 = scalar_lea.vmem [#allocation12], %s878_s13  ;;  %p1666_p11 = scmp.ne.s32.totalorder %s1656_s26, 0 }
  0x9b   : > { %944 = vmatpush3.bf16.msra.mxu1 %v943_v30  ;;  %s757_s29 = sshll.u32 %s399_s28, 4  ;;  %s1260_s13 = smov [#allocation12]   ;;  %s1592_s29 = int_to_ptr.vmem [resolvable:$true] %s757_s29 }
  0x9c   : > { %915 = vmatmul.mubr.msk.f32.vlgmr.msra.gmra.mrb[0].mxu0 %vm410_vm1, %v400_v5  ;;  %945 = vmatprep.subr.bf16.mxu1 %v1257_v2 }
  0x9d   : > { %936 = vmatprep.mubr.msk.f32.mxu0 %vm1258_vm0, %v1259_v4  ;;  %v515_v42 = vstv %s512_s2  ;;  %s896_s2 = sadd.s32 128, %s895_s21 }
  0x9e   : > { %v519_v45 = vstv %s518_s16  ;;  %s642_s16 = sand.u32 127, %s1332_s15  ;;  %s1172_s15 = scalar_lea.vmem %s1592_s29, 128 }
  0x9f   : > { %947 = vmatpush3.bf16.msra.mxu1 %v946_v32  ;;  %s643_s25 = sadd.s32 %s896_s2, %s642_s16  ;;  %s1590_s2 = scalar_lea.hbm %s1643_s9, %s892_s19 }
  0xa0   : > { %s644_s18 = sld [smem:[#allocation9 + %s643_s25]]  ;;  %s744_s16 = scalar_lea.sflag [#allocation4], %s1513_s4 }
  0xa1   : > { %s650_s22 = sld [smem:[#allocation10 + %s643_s25]]  ;;  %p1173_p6 = scmp.ne.s32.totalorder %s1592_s29, %s1172_s15 }
  0xa2   : > { %s1176_s25 = sshll.u32 %s1260_s13, 4  ;;  %s1177_s25 = int_to_ptr.vmem [resolvable:$false] %s1176_s25 }
  0xa3   : > { %p1174_p7 = pnand %p1173_p6, %p1666_p11  ;;  %p1179_p8 = scmp.lt.s32.totalorder %s1592_s29, %s1177_s25 }
  0xa5   : > { %p1175_p4 = pneg %p1174_p7 }
  0xa7   : > { %v651_v28 = vstv %s650_s22 }
 0x16f   : > { %v480_v7 = vpop.f32.mrb[0].mxu0 }
 0x170   : > { %v481_v8 = vadd.f32 %v884_v6, %v480_v7  ;;  %v916_v9 = vpop.f32.mrb[1].mxu0 }
 0x172   : > { %v485_v10 = vmul.f32 0.70710677, %v481_v8  ;;  %v484_v12 = vmul.f32 0.5, %v481_v8 }
 0x174   : > { %1044 = verf.f32 %v485_v10 }
 0x17e   : > { %v1045_v11 = vpop.eup %1044 }
 0x17f   : > { %v487_v13 = vadd.f32 1.0, %v1045_v11  ;;  %v658_v11 = vld [vmem:[%s1639_s5] sm:$0xff] }
 0x181   : > { %v488_v14 = vmul.f32 %v487_v13, %v484_v12  ;;  %v659_v12 = vld [vmem:[%s1639_s5 + $0x8] sm:$0xff]  ;;  %v660_v13 = vld [vmem:[%s1639_s5 + $0x10] sm:$0xff] }
 0x183   : > { %v490_v15 = vsel %vm489_vm2, %v488_v14, 0.0 }
 0x184   : > { %491 = vadd.xlane.f32.xlu0 %v490_v15  ;;  %v661_v15 = vld [vmem:[%s1639_s5 + $0x18] sm:$0xff] }
 0x211   : > { %v492_v16 = vpop.xlane.xlu0 %491 }
 0x212   : > { %v493_v17 = vrot.slane %v492_v16, 4 }
 0x214   : > { %v494_v18 = vadd.f32 %v493_v17, %v492_v16  ;;  %v952_v16 = vpack.c.bf16 %v661_v15, %v660_v13 }
 0x216   : > { %v495_v19 = vrot.slane %v494_v18, 2 }
 0x218   : > { %v496_v20 = vadd.f32 %v495_v19, %v494_v18 }
 0x21a   : > { %v497_v21 = vrot.slane %v496_v20, 1 }
 0x21c   : > { %v498_v22 = vadd.f32 %v497_v21, %v496_v20 }
 0x21e   : > { %v499_v23 = vmul.f32 0.00390625, %v498_v22 }
 0x220   : > { %v500_v24 = vsub.f32 %v488_v14, %v499_v23  ;;  %v949_v14 = vpack.c.bf16 %v659_v12, %v658_v11 }
 0x222   : > { %v501_v25 = vmul.f32 %v500_v24, %v500_v24  ;;  %950 = vmatpush3.bf16.msra.mxu0 %v949_v14 }
 0x223   : > { %951 = vmatprep.subr.bf16.mxu0 %v1257_v2  ;;  %v647_v2 = vstv %s644_s18  ;;  %s1178_s18 = scalar_lea.vmem %s1177_s25, 256 }
 0x224   : > { %v502_v26 = vsel %vm489_vm2, %v501_v25, 0.0  ;;  %p1180_p9 = scmp.lt.s32.totalorder %s1178_s18, %s1172_s15 }
 0x225   : > { %503 = vadd.xlane.f32.xlu0 %v502_v26 }
 0x226   : > { %953 = vmatpush3.bf16.msra.mxu0 %v952_v16  ;;  %p1181_p10 = por %p1180_p9, %p1179_p8 }
 0x228   : > { %p1182_p1 = pnand %p1181_p10, %p1175_p4 }
 0x2b2   : > { %v504_v33 = vpop.xlane.xlu0 %503 }
 0x2b3   : > { %v505_v34 = vrot.slane %v504_v33, 4 }
 0x2b5   : > { %v506_v35 = vadd.f32 %v505_v34, %v504_v33 }
 0x2b7   : > { %v507_v36 = vrot.slane %v506_v35, 2 }
 0x2b9   : > { %v508_v37 = vadd.f32 %v507_v36, %v506_v35  ;;  %v889_v36 = vld [vmem:[%s1640_s6] ss:$0 sm:$0xff] }
 0x2bb   : > { %v509_v38 = vrot.slane %v508_v37, 1 }
 0x2bd   : > { %v510_v39 = vadd.f32 %v509_v38, %v508_v37 }
 0x2bf   : > { %v511_v40 = vmul.f32 0.00390625, %v510_v39 }
 0x2c1   : > { %v513_v41 = vadd.f32 1e-05, %v511_v40 }
 0x2c3   : > { %1046 = vrsqrt.f32 %v513_v41 }
 0x2cd   : > { %v1047_v43 = vpop.eup %1046 }
 0x2ce   : > { %v516_v44 = vmul.f32 %v1047_v43, %v515_v42 }
 0x2d0   : > { %v517_v46 = vmul.f32 %v516_v44, %v500_v24 }
 0x2d2   : > { %v520_v47 = vadd.f32 %v519_v45, %v517_v46 }
 0x2d4   : > { %v522_v48 = vmul.f32 0.70710677, %v520_v47  ;;  %v521_v50 = vmul.f32 0.5, %v520_v47 }
 0x2d6   : > { %1048 = verf.f32 %v522_v48 }
 0x2e0   : > { %v1049_v49 = vpop.eup %1048 }
 0x2e1   : > { %v524_v51 = vadd.f32 1.0, %v1049_v49 }
 0x2e3   : > { %v525_v52 = vmul.f32 %v524_v51, %v521_v50 }
 0x2e5   : > { %926 = vmatmul.mubr.msk.f32.vlgmr.msra.gmra.mrb[0].mxu1 %vm489_vm2, %v525_v52 }
 0x3b8   : > { %v606_v54 = vpop.f32.mrb[0].mxu1 }
 0x3b9   : > { %v607_v55 = vadd.f32 %v886_v53, %v606_v54  ;;  %v927_v56 = vpop.f32.mrb[1].mxu1 }
 0x3bb   : > { %v611_v57 = vmul.f32 0.70710677, %v607_v55  ;;  %v610_v59 = vmul.f32 0.5, %v607_v55 }
 0x3bd   : > { %1050 = verf.f32 %v611_v57 }
 0x3c7   : > { %v1051_v58 = vpop.eup %1050 }
 0x3c8   : > { %v613_v60 = vadd.f32 1.0, %v1051_v58 }
 0x3ca   : > { %v614_v61 = vmul.f32 %v613_v60, %v610_v59 }
 0x3cc   : > { %v615_v62 = vsel %vm489_vm2, %v614_v61, 0.0 }
 0x3cd   : > { %616 = vadd.xlane.f32.xlu1 %v615_v62 }
 0x45a   : > { %v617_v63 = vpop.xlane.xlu1 %616 }
 0x45b   : > { %v618_v0 = vrot.slane %v617_v63, 4 }
 0x45d   : > { %v619_v1 = vadd.f32 %v618_v0, %v617_v63 }
 0x45f   : > { %v620_v3 = vrot.slane %v619_v1, 2 }
 0x461   : > { %v621_v4 = vadd.f32 %v620_v3, %v619_v1 }
 0x463   : > { %v622_v5 = vrot.slane %v621_v4, 1 }
 0x465   : > { %v623_v6 = vadd.f32 %v622_v5, %v621_v4 }
 0x467   : > { %v624_v7 = vmul.f32 0.00390625, %v623_v6 }
 0x469   : > { %v625_v8 = vsub.f32 %v614_v61, %v624_v7 }
 0x46b   : > { %v626_v9 = vmul.f32 %v625_v8, %v625_v8 }
 0x46d   : > { %v627_v10 = vsel %vm489_vm2, %v626_v9, 0.0 }
 0x46e   : > { %628 = vadd.xlane.f32.xlu1 %v627_v10 }
 0x4fb   : > { %v629_v17 = vpop.xlane.xlu1 %628 }
 0x4fc   : > { %v630_v18 = vrot.slane %v629_v17, 4 }
 0x4fe   : > { %v631_v19 = vadd.f32 %v630_v18, %v629_v17 }
 0x500   : > { %v632_v20 = vrot.slane %v631_v19, 2 }
 0x502   : > { %v633_v21 = vadd.f32 %v632_v20, %v631_v19 }
 0x504   : > { %v634_v22 = vrot.slane %v633_v21, 1 }
 0x506   : > { %v635_v23 = vadd.f32 %v634_v22, %v633_v21 }
 0x508   : > { %v636_v24 = vmul.f32 0.00390625, %v635_v23 }
 0x50a   : > { %v645_v25 = vadd.f32 1e-05, %v636_v24 }
 0x50c   : > { %1052 = vrsqrt.f32 %v645_v25 }
 0x516   : > { %v1053_v26 = vpop.eup %1052 }
 0x517   : > { %v648_v27 = vmul.f32 %v1053_v26, %v647_v2 }
 0x519   : > { %v649_v29 = vmul.f32 %v648_v27, %v625_v8 }
 0x51b   : > { %v652_v30 = vadd.f32 %v651_v28, %v649_v29 }
 0x51d   : > { %v654_v31 = vmul.f32 0.70710677, %v652_v30  ;;  %v653_v33 = vmul.f32 0.5, %v652_v30 }
 0x51f   : > { %1054 = verf.f32 %v654_v31 }
 0x529   : > { %v1055_v32 = vpop.eup %1054 }
 0x52a   : > { %v656_v34 = vadd.f32 1.0, %v1055_v32 }
 0x52c   : > { %v657_v35 = vmul.f32 %v656_v34, %v653_v33 }
 0x52e   : > { %937 = vmatmul.mubr.msk.f32.vlgmr.msra.gmra.mrb[2].mxu0 %vm489_vm2, %v657_v35 }
 0x601   : > { %v738_v37 = vpop.f32.mrb[2].mxu0 }
 0x602   : > { %v739_v38 = vadd.f32 %v889_v36, %v738_v37  ;;  %v938_v39 = vpop.f32.mrb[3].mxu0 }
 0x604   : > { %742 = vst.msk [vmem:[%s399_s28] sm:$0xff] %vm410_vm1, %v739_v38 }
 0x605   : > { %1185 = shalt.err (!%p1182_p1)
}
 0x606   : > { %s1186_s4 = scalar_lea.hbm %s1590_s2, 128  ;;  %s1190_s14 = scalar_lea.hbm %s1643_s9, 1024 }
 0x607   : > { %p1187_p5 = scmp.ne.s32.totalorder %s1590_s2, %s1186_s4  ;;  %p1191_p0 = scmp.lt.u32.totalorder %s1590_s2, %s1643_s9 }
 0x608   : > { %p1192_p13 = scmp.lt.u32.totalorder %s1190_s14, %s1186_s4  ;;  %p1194_p6 = scmp.lt.u32.totalorder %s1186_s4, %s1590_s2 }
 0x609   : > { %p1188_p3 = pnand %p1187_p5, %p1666_p11 }
 0x60a   : > { %p1193_p2 = por %p1192_p13, %p1191_p0 }
 0x60b   : > { %p1189_p12 = pneg %p1188_p3 }
 0x60c   : > { %p1195_p7 = por %p1194_p6, %p1193_p2 }
 0x60e   : > { %p1196_p4 = pnand %p1195_p7, %p1189_p12 }
 0x610   : > { %1199 = shalt.err (!%p1196_p4)
}
 0x611   : > { %972 = dma.vmem_to_hbm [thread:$0]  (%p1666_p11), %s1592_s29, 128, %s1590_s2, %s744_s16  }
 0x612 PF: > { %p1004_p8 = scmp.ge.s32.totalorder %s1250_s12, 2  ;;  %s769_s24 = sand.u32 1, %s1238_s30  }
 0x613   : > { %p1667_p9 = scmp.ne.s32.totalorder %s1657_s27, 0  ;;  %s770_s21 = scalar_lea.sflag [#allocation4], %s769_s24 }
 0x615   : > { %p992_p10 = pnand %p1004_p8, %p1667_p9 }
 0x617   : > { %1233 = dma.done.wait (!%p992_p10), %s770_s21, 128  }
 0x618   : > { %1235 = vsyncadd (!%p992_p10), %s770_s21, 4294967168  ;;  %p25_p1 = scmp.ge.s32.totalorder %s1437_s17, 10   ;;  %s1668_s30 = smov %s1242_s10 }
 0x619   : > { %s1669_s10 = smov %s1246_s11  ;;  %s1670_s11 = smov %s1448_s23 }
 0x61a   : > { %s1671_s12 = smov %s1437_s17  ;;  %27 = sbr.rel (!%p25_p1) target bundleno = 11 (0xb), region = 118 }
 0x621   :  { %775 = vsyncpa [#allocation3], 1 }
 0x622   :  { %777 = vsyncpa [#allocation3 + $0x1], 1 }
 0x623   :  { %778 = vsyncpa [#allocation7], 1 }
 0x624   :  { %779 = vsyncpa [#allocation4], 1 }
 0x625   :  { %781 = vsyncpa [#allocation4 + $0x1], 1 }
 0x626   :  { %782 = vsyncpa [#allocation5], 1 }
 0x627   :  { %784 = vsyncpa [#allocation5 + $0x1], 1 }
 0x628   :  { %785 = vsyncpa [#allocation11], 1 }

</bundles_post_ra>
